<compile_context>
chip_gen: v7x
topology: tpu7x:2x2x1
jax: 0.10.0
libtpu: 0.0.40
codegen_flags: <defaults>
</compile_context>

<pallas_src>
import jax
import jax.numpy as jnp
from jax.experimental import pallas as pl
from jax.experimental.pallas import tpu as pltpu


def _round_up(x, m):
    return ((x + m - 1) // m) * m


def _pad2(x, rows, cols):
    pr = rows - x.shape[0]
    pc = cols - x.shape[1]
    if pr or pc:
        x = jnp.pad(x, ((0, pr), (0, pc)))
    return x


def _pick_tile(n, target, base, waste=1.125):
    """Largest multiple of `base` <= min(target, round_up(n, base)) whose
    round_up(n, tile) padding waste is bounded by `waste`."""
    full = _round_up(n, base)
    cap = min(_round_up(min(target, full), base), full)
    t = cap
    while t > base:
        if _round_up(n, t) <= full * waste:
            return t
        t -= base
    return base


def _make_gcn_kernel(tk, rhs_resident, fuse_epilogue):
    """Kernel computing out = g @ rhs (accumulated over the k grid axis),
    optionally fusing bias + ReLU on the last contraction step."""

    def kernel(*refs):
        if fuse_epilogue:
            g_ref, rhs_ref, b_ref, o_ref = refs
        else:
            g_ref, rhs_ref, o_ref = refs

        k = pl.program_id(1)

        if rhs_resident:
            # rhs is loaded once for the whole grid; slice the k-th chunk.
            off = pl.multiple_of(k * tk, 128)
            rhs = rhs_ref[pl.ds(off, tk), :]
        else:
            rhs = rhs_ref[...]

        # Cast the f32 g tile to bf16 in-kernel (saves a wrapper-side HBM
        # pad/cast pass); f32 accumulation on the MXU.
        part = jnp.dot(
            g_ref[...].astype(jnp.bfloat16), rhs,
            preferred_element_type=jnp.float32,
        )

        # Output block is resident across the k axis (its index_map ignores
        # k), so accumulate directly into it — no scratch accumulator.
        @pl.when(k == 0)
        def _init():
            o_ref[...] = part

        @pl.when(k > 0)
        def _acc():
            o_ref[...] += part

        if fuse_epilogue:
            @pl.when(k == pl.num_programs(1) - 1)
            def _finalize():
                o_ref[...] = jnp.maximum(o_ref[...] + b_ref[...], 0.0)

    return kernel


def gcn_forward(g, h, weight, bias, *, tm_target=1024, tk_target=2048,
                rhs_resident_budget=4 * 1024 * 1024):
    """g: [N, N], h: [N, in_dim], weight: [out_dim, in_dim] (PyTorch layout),
    bias: [out_dim].  Returns relu(g @ h @ W.T + b) as [N, out_dim] float32."""
    N, in_dim = h.shape
    out_dim = weight.shape[0]

    # TODO(synk): dropout with p > 0 (training mode) not implemented; module
    # is exercised with p = 0.0 which is nn.Identity (eval semantics).

    in_pad = _round_up(in_dim, 128)
    out_pad = _round_up(out_dim, 128)

    # Reassociate (g@h)@W.T -> g@(h@W.T) only when it shrinks the kernel's
    # contraction width (i.e. reduces the O(N^2 * width) MXU work + RHS bytes).
    fuse = out_pad <= in_pad
    width = out_pad if fuse else in_pad

    base_m, base_k = 8, 128
    nr_min = _round_up(N, base_m)

    tm = _pick_tile(N, tm_target, base_m)
    # v7x megacore: keep at least 2 row tiles so both TensorCores get work
    # (costs nothing on single-TC v5e/v6e).
    if nr_min >= 2 * base_m and _round_up(N, tm) // tm < 2:
        tm = _pick_tile(N, _round_up(-(-nr_min // 2), base_m), base_m)
    tk = _pick_tile(N, tk_target, base_k)

    nr = _round_up(N, tm)
    nk = _round_up(N, tk)

    # g stays f32 (no bf16 cast pass in HBM); pad only when tiles require it.
    g_p = g if (nr == N and nk == N) else _pad2(g, nr, nk)
    g_p = g_p.astype(jnp.float32)

    # Small right-hand operand: either h @ W.T ([N, out_pad]) or h itself.
    rhs = (h @ weight.T) if fuse else h
    rhs_p = _pad2(rhs, nk, width).astype(jnp.bfloat16)

    # Keep rhs resident in VMEM when small enough; otherwise stream per tile.
    rhs_resident = nk * width * 2 <= rhs_resident_budget
    if rhs_resident:
        rhs_spec = pl.BlockSpec((nk, width), lambda i, k: (0, 0))
    else:
        rhs_spec = pl.BlockSpec((tk, width), lambda i, k: (k, 0))

    in_specs = [pl.BlockSpec((tm, tk), lambda i, k: (i, k)), rhs_spec]
    args = [g_p, rhs_p]
    if fuse:
        b_p = (jnp.pad(bias, (0, out_pad - out_dim))
               .reshape(1, out_pad).astype(jnp.float32))
        in_specs.append(pl.BlockSpec((1, out_pad), lambda i, k: (0, 0)))
        args.append(b_p)

    grid = (nr // tm, nk // tk)        # (row tiles, contraction tiles) K last
    rhs_reads = 1 if rhs_resident else grid[0]

    kernel = _make_gcn_kernel(tk=tk, rhs_resident=rhs_resident,
                              fuse_epilogue=fuse)

    out_padded = pl.pallas_call(
        kernel,
        out_shape=jax.ShapeDtypeStruct((nr, width), jnp.float32),
        grid_spec=pltpu.PrefetchScalarGridSpec(
            num_scalar_prefetch=0,
            grid=grid,
            in_specs=in_specs,
            out_specs=pl.BlockSpec((tm, width), lambda i, k: (i, 0)),
        ),
        compiler_params=pltpu.CompilerParams(
            # Row tiles independent -> "parallel" (megacore on v7x);
            # contraction axis carries the resident output -> "arbitrary".
            dimension_semantics=("parallel", "arbitrary"),
            # Worst-case plan (1024x2048 f32 g dbl-buffered + rhs + out) stays
            # well under 48 MiB, which also fits v7x's 64 MiB physical VMEM.
            vmem_limit_bytes=48 * 1024 * 1024,
        ),
        cost_estimate=pl.CostEstimate(
            flops=2 * nr * nk * width,
            transcendentals=0,
            bytes_accessed=(g_p.size * 4
                            + rhs_p.size * 2 * rhs_reads
                            + nr * width * 4),
        ),
    )(*args)

    if fuse:
        return out_padded[:N, :out_dim]
    # Non-reassociated path: kernel produced g @ h; apply Linear + ReLU after.
    agg = out_padded[:N, :in_dim]
    return jnp.maximum(agg @ weight.T + bias, 0.0)


if __name__ == "__main__":
    key = jax.random.PRNGKey(0)
    keys = jax.random.split(key, 8)

    def run_case(N, in_dim, out_dim, ks):
        kg, kh, kw, kb = ks
        g = jax.random.normal(kg, (N, N), dtype=jnp.float32)
        h = jax.random.normal(kh, (N, in_dim), dtype=jnp.float32)
        bound = 1.0 / jnp.sqrt(in_dim)
        weight = jax.random.uniform(kw, (out_dim, in_dim), jnp.float32,
                                    -bound, bound)
        bias = jax.random.uniform(kb, (out_dim,), jnp.float32, -bound, bound)

        out = jax.block_until_ready(gcn_forward(g, h, weight, bias))

        # Pure-JAX reference of the original (unreassociated) semantics.
        # Loose tolerance accounts for bf16 matmul inputs (f32 accumulation).
        ref = jnp.maximum((g @ h) @ weight.T + bias, 0.0)
        assert out.shape == (N, out_dim)
        err = float(jnp.max(jnp.abs(out - ref)))
        assert jnp.allclose(out, ref, atol=5e-2, rtol=5e-2), err

    # Reassociated path (out_dim <= in_dim), shapes from the module's forward.
    run_case(8, 32, 16, keys[:4])
    # Non-reassociated path (out_pad > in_pad) with an unaligned node count.
    run_case(40, 16, 160, keys[4:])

    print("KERNEL_OK")
</pallas_src>

<mosaic_0001>
module attributes {stable_mosaic.version = 11 : i64} {
  func.func @kernel(%arg0: i32, %arg1: i32, %arg2: memref<8x128xf32, #tpu.memory_space<vmem>>, %arg3: memref<128x128xbf16, #tpu.memory_space<vmem>>, %arg4: memref<1x128xf32, #tpu.memory_space<vmem>>, %arg5: memref<8x128xf32, #tpu.memory_space<vmem>>) attributes {dimension_semantics = [#tpu.dimension_semantics<parallel>, #tpu.dimension_semantics<arbitrary>], iteration_bounds = array<i64: 1, 1>, scalar_prefetch = 0 : i64, scratch_operands = 0 : i64, tpu.core_type = #tpu.core_type<tc>, window_params = [{transform_indices = @transform_0, window_bounds = array<i64: 8, 128>}, {pipeline_mode = #tpu.pipeline_mode<synchronous>, transform_indices = @transform_1, window_bounds = array<i64: 128, 128>}, {pipeline_mode = #tpu.pipeline_mode<synchronous>, transform_indices = @transform_2, window_bounds = array<i64: 1, 128>}, {transform_indices = @transform_3, window_bounds = array<i64: 8, 128>}]} {
    %c128_i32 = arith.constant 128 : i32
    %0 = arith.muli %arg1, %c128_i32 : i32
    %1 = tpu.assume_multiple %0, 128 : i32
    %2 = arith.index_cast %1 : i32 to index
    %c0 = arith.constant 0 : index
    %3 = vector.load %arg3[%2, %c0] : memref<128x128xbf16, #tpu.memory_space<vmem>>, vector<128x128xbf16>
    %c0_0 = arith.constant 0 : index
    %c0_1 = arith.constant 0 : index
    %4 = vector.load %arg2[%c0_0, %c0_1] : memref<8x128xf32, #tpu.memory_space<vmem>>, vector<8x128xf32>
    %5 = arith.truncf %4 : vector<8x128xf32> to vector<8x128xbf16>
    %cst = arith.constant dense<0.000000e+00> : vector<8x128xf32>
    %6 = tpu.matmul %5, %3, %cst {dimension_numbers = #tpu.dot_dimension_numbers<[1], [0], [0], [1], [0, 0, 1, 1], [], []>} : vector<8x128xbf16>, vector<128x128xbf16>, vector<8x128xf32> -> vector<8x128xf32>
    %c0_i32 = arith.constant 0 : i32
    %7 = arith.cmpi eq, %arg1, %c0_i32 : i32
    %8 = arith.extui %7 : i1 to i32
    %c0_i32_2 = arith.constant 0 : i32
    %9 = arith.cmpi ne, %8, %c0_i32_2 : i32
    scf.if %9 {
      %c0_7 = arith.constant 0 : index
      %c0_8 = arith.constant 0 : index
      %16 = vector.load %arg5[%c0_7, %c0_8] : memref<8x128xf32, #tpu.memory_space<vmem>>, vector<8x128xf32>
      tpu.vector_store %arg5[%c0_7, %c0_8], %6 {strides = array<i32>} : memref<8x128xf32, #tpu.memory_space<vmem>>, vector<8x128xf32>,
    } else {
    }
    %c0_i32_3 = arith.constant 0 : i32
    %10 = arith.cmpi sgt, %arg1, %c0_i32_3 : i32
    %11 = arith.extui %10 : i1 to i32
    %c0_i32_4 = arith.constant 0 : i32
    %12 = arith.cmpi ne, %11, %c0_i32_4 : i32
    scf.if %12 {
      %c0_7 = arith.constant 0 : index
      %c0_8 = arith.constant 0 : index
      %16 = vector.load %arg5[%c0_7, %c0_8] : memref<8x128xf32, #tpu.memory_space<vmem>>, vector<8x128xf32>
      %17 = arith.addf %16, %6 : vector<8x128xf32>
      %c0_9 = arith.constant 0 : index
      %c0_10 = arith.constant 0 : index
      %18 = vector.load %arg5[%c0_9, %c0_10] : memref<8x128xf32, #tpu.memory_space<vmem>>, vector<8x128xf32>
      tpu.vector_store %arg5[%c0_9, %c0_10], %17 {strides = array<i32>} : memref<8x128xf32, #tpu.memory_space<vmem>>, vector<8x128xf32>,
    } else {
    }
    %c0_i32_5 = arith.constant 0 : i32
    %13 = arith.cmpi eq, %arg1, %c0_i32_5 : i32
    %14 = arith.extui %13 : i1 to i32
    %c0_i32_6 = arith.constant 0 : i32
    %15 = arith.cmpi ne, %14, %c0_i32_6 : i32
    scf.if %15 {
      %c0_7 = arith.constant 0 : index
      %c0_8 = arith.constant 0 : index
      %16 = vector.load %arg5[%c0_7, %c0_8] : memref<8x128xf32, #tpu.memory_space<vmem>>, vector<8x128xf32>
      %c0_9 = arith.constant 0 : index
      %c0_10 = arith.constant 0 : index
      %17 = vector.load %arg4[%c0_9, %c0_10] : memref<1x128xf32, #tpu.memory_space<vmem>>, vector<1x128xf32>
      %18 = vector.broadcast %17 : vector<1x128xf32> to vector<8x128xf32>
      %19 = arith.addf %16, %18 : vector<8x128xf32>
      %cst_11 = arith.constant 0.000000e+00 : f32
      %20 = vector.broadcast %cst_11 : f32 to vector<8x128xf32>
      %21 = arith.maximumf %19, %20 : vector<8x128xf32>
      %c0_12 = arith.constant 0 : index
      %c0_13 = arith.constant 0 : index
      %22 = vector.load %arg5[%c0_12, %c0_13] : memref<8x128xf32, #tpu.memory_space<vmem>>, vector<8x128xf32>
      tpu.vector_store %arg5[%c0_12, %c0_13], %21 {strides = array<i32>} : memref<8x128xf32, #tpu.memory_space<vmem>>, vector<8x128xf32>,
    } else {
    }
    return
  }
  func.func @transform_0(%arg0: i32, %arg1: i32) -> (i32, i32) {
    %c0_i32 = arith.constant 0 : i32
    return %arg0, %arg1 : i32, i32
  }
  func.func @transform_1(%arg0: i32, %arg1: i32) -> (i32, i32) {
    %c0_i32 = arith.constant 0 : i32
    %c0_i32_0 = arith.constant 0 : i32
    %c0_i32_1 = arith.constant 0 : i32
    return %c0_i32, %c0_i32_0 : i32, i32
  }
  func.func @transform_2(%arg0: i32, %arg1: i32) -> (i32, i32) {
    %c0_i32 = arith.constant 0 : i32
    %c0_i32_0 = arith.constant 0 : i32
    %c0_i32_1 = arith.constant 0 : i32
    return %c0_i32, %c0_i32_0 : i32, i32
  }
  func.func @transform_3(%arg0: i32, %arg1: i32) -> (i32, i32) {
    %c0_i32 = arith.constant 0 : i32
    %c0_i32_0 = arith.constant 0 : i32
    return %arg0, %c0_i32 : i32, i32
  }
}

</mosaic_0001>

<bundles_post_ra>
// kernel: tpu_custom_call.1
= control target key start
LH: loop header
LB: loop body
LE: loop exit
PB: predicated region body
PF: predicated region fallthrough
CT: control target
= control target key end

     0   :  { %8 = vsyncpa [#allocation3], 0  ;;  %s395_s0 = inlined_call_operand.hbm [shape: f32[8,128], index: 0, kind: input, shape index: {}]   ;;  %s396_s1 = inlined_call_operand.hbm [shape: bf16[128,128], index: 1, kind: input, shape index: {}]   ;;  %s397_s2 = inlined_call_operand.vmem [shape: f32[1,128], index: 2, kind: input, shape index: {}]   ;;  %s398_s3 = inlined_call_operand.hbm [shape: f32[8,128], index: 3, kind: output, shape index: {}]  }
   0x1   :  { %9 = vsyncpa [#allocation6], 0 }
   0x2   :  { %10 = vsyncpa [#allocation4], 0  ;;  %s322_s12 = smov [#allocation2]   ;;  %s323_s14 = smov [#allocation5]  }
   0x3   :  { %s17_s13 = sshll.u32 %s322_s12, 4  ;;  %s26_s15 = sshll.u32 %s323_s14, 4  ;;  %s18_s13 = int_to_ptr.vmem [resolvable:$true] %s17_s13  ;;  %s349_s15 = int_to_ptr.vmem [resolvable:$true] %s26_s15 }
   0x4   :  { %s250_s18 = scalar_lea.hbm %s395_s0, 128 }
   0x5   :  { %p251_p0 = scmp.ne.s32.totalorder %s395_s0, %s250_s18  ;;  %p254_p1 = scmp.lt.u32.totalorder %s250_s18, %s395_s0 }
   0x7   :  { %p256_p2 = pnand %p254_p1, %p251_p0 }
   0x9   :  { %259 = shalt.err (!%p256_p2)
}
   0xa   :  { %s260_s23 = scalar_lea.vmem %s18_s13, 128  ;;  %p265_p4 = scmp.lt.s32.totalorder %s18_s13, %s18_s13 }
   0xb   :  { %p261_p3 = scmp.ne.s32.totalorder %s18_s13, %s260_s23  ;;  %p266_p5 = scmp.lt.s32.totalorder %s260_s23, %s260_s23 }
   0xd   :  { %p267_p6 = por %p266_p5, %p265_p4 }
   0xf   :  { %p268_p7 = pnand %p267_p6, %p261_p3 }
  0x11   :  { %271 = shalt.err (!%p268_p7)
}
  0x12   :  { %20 = dma.hbm_to_vmem [thread:$0]  %s395_s0, 128, %s18_s13, [#allocation3]  }
  0x13   :  { %s272_s28 = scalar_lea.hbm %s396_s1, 1024 }
  0x14   :  { %p273_p8 = scmp.ne.s32.totalorder %s396_s1, %s272_s28  ;;  %p276_p9 = scmp.lt.u32.totalorder %s272_s28, %s396_s1 }
  0x16   :  { %p278_p10 = pnand %p276_p9, %p273_p8 }
  0x18   :  { %281 = shalt.err (!%p278_p10)
}
  0x19   :  { %s282_s6 = scalar_lea.vmem %s349_s15, 1024  ;;  %p287_p12 = scmp.lt.s32.totalorder %s349_s15, %s349_s15 }
  0x1a   :  { %p283_p11 = scmp.ne.s32.totalorder %s349_s15, %s282_s6  ;;  %p288_p13 = scmp.lt.s32.totalorder %s282_s6, %s282_s6 }
  0x1c   :  { %p289_p0 = por %p288_p13, %p287_p12 }
  0x1e   :  { %p290_p1 = pnand %p289_p0, %p283_p11 }
  0x20   :  { %293 = shalt.err (!%p290_p1)
}
  0x21   :  { %s324_s0 = smov 64   ;;  %s325_s7 = smov 4  }
  0x22   :  { %32 = dma.hbm_to_vmem [thread:$0]  %s396_s1, 1024, %s349_s15, [#allocation6], %s324_s0, %s324_s0, %s325_s7  }
  0x23   :  { %316 = dma.done.wait [#allocation3], 128  }
  0x24   :  { %317 = vsyncadd [#allocation3], 4294967168 }
  0x25   :  { %318 = dma.done.wait [#allocation6], 1024  }
  0x26   :  { %319 = vsyncadd [#allocation6], 4294966272  ;;  %v326_v0 = vmov 0.0   ;;  %vm327_vm0 = vmmov 0   ;;  %v242_v1 = vld [vmem:[#allocation5] sm:$0xff]   ;;  %v243_v2 = vld [vmem:[#allocation5 + $0x8] sm:$0xff]  }
  0x27   :  { %215 = vmatprep.subr.bf16.mxu0 %v326_v0  ;;  %231 = vmatprep.mubr.msk.bf16.mxu0 %vm327_vm0, %v326_v0  ;;  %v244_v3 = vld [vmem:[#allocation5 + $0x10] sm:$0xff]   ;;  %v245_v4 = vld [vmem:[#allocation5 + $0x18] sm:$0xff]   ;;  %v246_v5 = vld [vmem:[#allocation5 + $0x20] sm:$0xff]   ;;  %s328_s11 = smov [#allocation7]  }
  0x28   :  { %216 = vmatpush3.bf16.msra.mxu0 %v242_v1  ;;  %v247_v6 = vld [vmem:[#allocation5 + $0x28] sm:$0xff]   ;;  %v248_v7 = vld [vmem:[#allocation5 + $0x30] sm:$0xff]   ;;  %v249_v8 = vld [vmem:[#allocation5 + $0x38] sm:$0xff]   ;;  %s185_s12 = sshll.u32 %s328_s11, 4  ;;  %s186_s12 = int_to_ptr.vmem [resolvable:$true] %s185_s12 }
  0x29   :  { %217 = vmatprep.subr.bf16.mxu0 %v326_v0  ;;  %v63_v9 = vld [vmem:[#allocation2] sm:$0xff]  ;;  %s294_s13 = scalar_lea.vmem %s186_s12, 128  ;;  %p299_p3 = scmp.lt.s32.totalorder %s186_s12, %s186_s12 }
  0x2a   :  { %v64_v10 = vpack.c.bf16 %v63_v9, %v63_v9  ;;  %v205_v11 = vld [vmem:[%s397_s2] ss:$0 sm:$0xff]  ;;  %p295_p2 = scmp.ne.s32.totalorder %s186_s12, %s294_s13  ;;  %p300_p4 = scmp.lt.s32.totalorder %s294_s13, %s294_s13 }
  0x2c   :  { %218 = vmatpush3.bf16.msra.mxu0 %v243_v2  ;;  %p301_p5 = por %p300_p4, %p299_p3 }
  0x2d   :  { %219 = vmatprep.subr.bf16.mxu0 %v326_v0 }
  0x2e   :  { %p302_p6 = pnand %p301_p5, %p295_p2 }
  0x30   :  { %220 = vmatpush3.bf16.msra.mxu0 %v244_v3 }
  0x31   :  { %221 = vmatprep.subr.bf16.mxu0 %v326_v0 }
  0x34   :  { %222 = vmatpush3.bf16.msra.mxu0 %v245_v4 }
  0x35   :  { %223 = vmatprep.subr.bf16.mxu0 %v326_v0 }
  0x38   :  { %224 = vmatpush3.bf16.msra.mxu0 %v246_v5 }
  0x39   :  { %225 = vmatprep.subr.bf16.mxu0 %v326_v0 }
  0x3c   :  { %226 = vmatpush3.bf16.msra.mxu0 %v247_v6 }
  0x3d   :  { %227 = vmatprep.subr.bf16.mxu0 %v326_v0 }
  0x40   :  { %228 = vmatpush3.bf16.msra.mxu0 %v248_v7 }
  0x41   :  { %229 = vmatprep.subr.bf16.mxu0 %v326_v0 }
  0x44   :  { %230 = vmatpush3.bf16.msra.mxu0 %v249_v8 }
  0x47   :  { %232 = vmatmul.mubr.bf16.vlgmr.msra.gmra.mrb[0].mxu0 %v64_v10 }
 0x11a   :  { %v147_v12 = vpop.f32.mrb[0].mxu0 }
 0x11b   :  { %v233_v13 = vpop.f32.mrb[1].mxu0  ;;  %v176_v14 = vadd.f32 %v205_v11, %v147_v12 }
 0x11c   :  { %v150_v15 = vpop.f32.mrb[2].mxu0 }
 0x11d   :  { %v234_v16 = vpop.f32.mrb[3].mxu0  ;;  %v177_v17 = vmax.f32 %v176_v14, 0.0 }
 0x11f   :  { %178 = vst [vmem:[#allocation7] sm:$0xff] %v177_v17 }
 0x120   :  { %305 = shalt.err (!%p302_p6)
}
 0x121   :  { %s306_s2 = scalar_lea.hbm %s398_s3, 128 }
 0x122   :  { %p307_p7 = scmp.ne.s32.totalorder %s398_s3, %s306_s2  ;;  %p310_p8 = scmp.lt.u32.totalorder %s306_s2, %s398_s3 }
 0x124   :  { %p312_p9 = pnand %p310_p8, %p307_p7 }
 0x126   :  { %315 = shalt.err (!%p312_p9)
}
 0x127   :  { %188 = dma.vmem_to_hbm [thread:$0]  %s186_s12, 128, %s398_s3, [#allocation4]  }
 0x128   :  { %320 = dma.done.wait [#allocation4], 128  }
 0x129   :  { %321 = vsyncadd [#allocation4], 4294967168 }
 0x12a   :  { %192 = vsyncpa [#allocation3], 1 }
 0x12b   :  { %193 = vsyncpa [#allocation6], 1 }
 0x12c   :  { %194 = vsyncpa [#allocation4], 1 }

</bundles_post_ra>
